<compile_context>
chip_gen: v5e
topology: v5e:2x2
jax: 0.10.0
libtpu: 0.0.40
codegen_flags: <defaults>
</compile_context>

<pallas_src>
import math

import jax
import jax.numpy as jnp
from jax.experimental import pallas as pl
from jax.experimental.pallas import tpu as pltpu


def _layernorm(v, g, b, eps=1e-5):
    mu = jnp.mean(v, axis=-1, keepdims=True)
    var = jnp.mean((v - mu) ** 2, axis=-1, keepdims=True)
    return (v - mu) * jax.lax.rsqrt(var + eps) * g + b


def _gelu_tanh(x):
    c = math.sqrt(2.0 / math.pi)
    return 0.5 * x * (1.0 + jnp.tanh(c * (x + 0.044715 * x * x * x)))


def make_block_kernel(n_head, exp_dtype):
    def block_kernel(x_ref,
                     ln1g_ref, ln1b_ref,
                     wqkv_ref, bqkv_ref,
                     wpr_ref, bpr_ref,
                     ln2g_ref, ln2b_ref,
                     wfc_ref, bfc_ref,
                     wp2_ref, bp2_ref,
                     out_ref):
        BT, T, C = x_ref.shape
        hd = C // n_head
        M = BT * T                      # rows fed to every projection matmul
        H = BT * n_head                 # batch axis for the attention matmuls

        x = x_ref[...].astype(jnp.float32).reshape(M, C)   # f32 residual stream

        # ---- LayerNorm 1 (f32, VPU) ----
        h = _layernorm(x, ln1g_ref[0], ln1b_ref[0])

        # ---- fused qkv projection (bf16 operands, f32 accumulate) ----
        # 1/sqrt(hd) is already folded into the q-columns of wqkv/bqkv.
        qkv = jnp.dot(h.astype(jnp.bfloat16), wqkv_ref[...],
                      preferred_element_type=jnp.float32) + bqkv_ref[0]

        def to_heads(t2d):   # (M, C) -> (BT*n_head, T, hd) via one planned relayout
            t = t2d.reshape(BT, T, n_head, hd)
            t = jnp.swapaxes(t, 1, 2)                       # (BT, n_head, T, hd)
            return t.reshape(H, T, hd).astype(jnp.bfloat16)

        qh = to_heads(qkv[:, 0 * C:1 * C])
        kh = to_heads(qkv[:, 1 * C:2 * C])
        vh = to_heads(qkv[:, 2 * C:3 * C])

        # ---- causal attention: batched MXU matmuls over (H, T, *) ----
        att = jnp.einsum("htd,hsd->hts", qh, kh,
                         preferred_element_type=jnp.float32)        # (H, T, T)
        row = jax.lax.broadcasted_iota(jnp.int32, (T, T), 0)
        col = jax.lax.broadcasted_iota(jnp.int32, (T, T), 1)
        att = jnp.where(row >= col, att, -jnp.inf)                  # 2D mask, bcast over H
        att = att - jnp.max(att, axis=-1, keepdims=True)

        p = jnp.exp(att.astype(exp_dtype))                          # bf16 EUP on v6e/v7x
        denom = jnp.sum(p.astype(jnp.float32), axis=-1, keepdims=True)
        inv = pl.reciprocal(denom, approx=True)                     # EUP reciprocal
        p = (p.astype(jnp.float32) * inv).astype(jnp.bfloat16)

        yh = jnp.einsum("hts,hsd->htd", p, vh,
                        preferred_element_type=jnp.float32)         # (H, T, hd)
        y = jnp.swapaxes(yh.reshape(BT, n_head, T, hd), 1, 2).reshape(M, C)

        # ---- attention output projection + residual ----
        y = jnp.dot(y.astype(jnp.bfloat16), wpr_ref[...],
                    preferred_element_type=jnp.float32) + bpr_ref[0]
        x1 = x + y

        # ---- LayerNorm 2 + MLP (tanh GELU) + residual ----
        h2 = _layernorm(x1, ln2g_ref[0], ln2b_ref[0])
        f = jnp.dot(h2.astype(jnp.bfloat16), wfc_ref[...],
                    preferred_element_type=jnp.float32) + bfc_ref[0]
        g = _gelu_tanh(f)
        m = jnp.dot(g.astype(jnp.bfloat16), wp2_ref[...],
                    preferred_element_type=jnp.float32) + bp2_ref[0]

        out_ref[...] = (x1 + m).reshape(BT, T, C).astype(out_ref.dtype)

        # TODO(synk): for long sequences (T >= ~512 on v7x, ~1k on v5e/v6e) replace the
        # materialized (H, T, T) scores with a flash-style KV-tiled online softmax
        # (extra 'arbitrary' grid axis) with block-level causal skip of masked KV tiles.

    return block_kernel


def _pick_b_tile(B, T, target_m=256):
    """Largest divisor of B with B_TILE*T <= target_m, keeping >=2 grid steps
    (v7x has 2 TensorCores on the parallel axis) unless M is already filled."""
    best = 1
    for bt in range(1, B + 1):
        if B % bt != 0:
            continue
        if bt * T > max(target_m, T):
            break
        if bt > 1 and B // bt < 2 and best * T < target_m:
            continue
        best = bt
    return best


def _exp_dtype_for_device():
    try:
        kind = jax.devices()[0].device_kind.lower()
    except Exception:
        return jnp.float32
    if ("v6" in kind) or ("v7" in kind) or ("7x" in kind):
        return jnp.bfloat16            # bf16 EUP path
    return jnp.float32                 # v5e and older: no bf16 EUP


def _vmem_capacity_bytes():
    try:
        return int(pltpu.get_tpu_info().vmem_capacity_bytes)
    except Exception:
        return 64 << 20                # conservative (v7x per-TC)


def block_forward(x, params, n_head):
    B, T, C = x.shape
    (ln1g, ln1b, wqkv, bqkv, wpr, bpr,
     ln2g, ln2b, wfc, bfc, wp2, bp2) = params

    b_tile = _pick_b_tile(B, T)
    grid = (B // b_tile,)

    # Invariant weight/bias blocks: constant index_map + single buffer (no point
    # double-buffering data that never changes across grid steps).
    def wspec(shape):
        return pl.BlockSpec(shape, lambda b: (0, 0), pipeline_mode=pl.Buffered(1))

    # VMEM budget: bf16 weights (single-buffered), f32 params, double-buffered I/O
    # slabs, generous transient estimate; clamped to device capacity minus headroom.
    M = b_tile * T
    H = b_tile * n_head
    weight_bytes = 2 * (3 * C * C + C * C + 4 * C * C + 4 * C * C)
    param_bytes = 4 * 13 * C
    io_bytes = 2 * 2 * (b_tile * T * C * 4)
    act_bytes = 4 * M * (16 * C) + 8 * H * T * T
    vmem_req = weight_bytes + param_bytes + io_bytes + 2 * act_bytes + (8 << 20)
    vmem_cap = _vmem_capacity_bytes()
    vmem_bytes = int(min(max(vmem_req, 32 << 20), vmem_cap - (16 << 20)))
    vmem_bytes = max(vmem_bytes, 16 << 20)

    # Advisory cost estimate so XLA can overlap surrounding HLO with this call.
    flops = 2 * B * T * 12 * C * C + 4 * B * T * T * C
    transcendentals = B * n_head * T * T + B * T * 4 * C
    bytes_accessed = weight_bytes + param_bytes + 2 * B * T * C * 4
    cost = pl.CostEstimate(flops=int(flops), transcendentals=int(transcendentals),
                           bytes_accessed=int(bytes_accessed))

    kernel = make_block_kernel(n_head, _exp_dtype_for_device())

    return pl.pallas_call(
        kernel,
        out_shape=jax.ShapeDtypeStruct((B, T, C), x.dtype),
        grid=grid,
        in_specs=[
            pl.BlockSpec((b_tile, T, C), lambda b: (b, 0, 0)),   # x slab
            wspec((1, C)), wspec((1, C)),                        # ln1 gamma / beta (f32)
            wspec((C, 3 * C)), wspec((1, 3 * C)),                # c_attn W^T (bf16), b (f32)
            wspec((C, C)), wspec((1, C)),                        # attn c_proj W^T (bf16), b
            wspec((1, C)), wspec((1, C)),                        # ln2 gamma / beta (f32)
            wspec((C, 4 * C)), wspec((1, 4 * C)),                # mlp c_fc W^T (bf16), b
            wspec((4 * C, C)), wspec((1, C)),                    # mlp c_proj W^T (bf16), b
        ],
        out_specs=pl.BlockSpec((b_tile, T, C), lambda b: (b, 0, 0)),
        compiler_params=pltpu.CompilerParams(
            dimension_semantics=("parallel",),
            vmem_limit_bytes=vmem_bytes),
        cost_estimate=cost,
    )(x, ln1g, ln1b, wqkv, bqkv, wpr, bpr, ln2g, ln2b, wfc, bfc, wp2, bp2)


def init_params(key, C):
    """PyTorch-equivalent parameters.  Linear weights are stored pre-transposed
    (in_features, out_features) in bf16 (MXU operand dtype); LN params / biases f32."""
    ks = jax.random.split(key, 6)
    s = 0.02
    ln1g = jnp.ones((1, C), jnp.float32)
    ln1b = jnp.zeros((1, C), jnp.float32)
    ln2g = jnp.ones((1, C), jnp.float32)
    ln2b = jnp.zeros((1, C), jnp.float32)
    wqkv = (s * jax.random.normal(ks[0], (C, 3 * C), jnp.float32)).astype(jnp.bfloat16)
    bqkv = s * jax.random.normal(ks[1], (1, 3 * C), jnp.float32)
    wpr = (s * jax.random.normal(ks[2], (C, C), jnp.float32)).astype(jnp.bfloat16)
    bpr = jnp.zeros((1, C), jnp.float32)
    wfc = (s * jax.random.normal(ks[3], (C, 4 * C), jnp.float32)).astype(jnp.bfloat16)
    bfc = s * jax.random.normal(ks[4], (1, 4 * C), jnp.float32)
    wp2 = (s * jax.random.normal(ks[5], (4 * C, C), jnp.float32)).astype(jnp.bfloat16)
    bp2 = jnp.zeros((1, C), jnp.float32)
    return (ln1g, ln1b, wqkv, bqkv, wpr, bpr, ln2g, ln2b, wfc, bfc, wp2, bp2)


def prepare_block_params(params, n_head):
    """One-time weight transform: fold 1/sqrt(hd) into the q-columns of the qkv
    projection so the kernel needs no per-step scale multiply."""
    (ln1g, ln1b, wqkv, bqkv, wpr, bpr,
     ln2g, ln2b, wfc, bfc, wp2, bp2) = params
    C = ln1g.shape[-1]
    hd = C // n_head
    scale = 1.0 / math.sqrt(hd)
    scale_vec = jnp.concatenate([jnp.full((C,), scale, jnp.float32),
                                 jnp.ones((2 * C,), jnp.float32)])
    wqkv_s = (wqkv.astype(jnp.float32) * scale_vec[None, :]).astype(wqkv.dtype)
    bqkv_s = bqkv * scale_vec[None, :]
    return (ln1g, ln1b, wqkv_s, bqkv_s, wpr, bpr, ln2g, ln2b, wfc, bfc, wp2, bp2)


def block_reference(x, params, n_head):
    """Pure-JAX f32 reference of the PyTorch Block forward, for correctness check."""
    (ln1g, ln1b, wqkv, bqkv, wpr, bpr,
     ln2g, ln2b, wfc, bfc, wp2, bp2) = params
    wqkv, wpr, wfc, wp2 = (w.astype(jnp.float32) for w in (wqkv, wpr, wfc, wp2))
    B, T, C = x.shape
    hd = C // n_head

    h = _layernorm(x, ln1g[0], ln1b[0])
    qkv = h @ wqkv + bqkv[0]
    q, k, v = jnp.split(qkv, 3, axis=-1)

    def heads(t):  # (B,T,C) -> (B,nh,T,hd)
        return t.reshape(B, T, n_head, hd).transpose(0, 2, 1, 3)

    q, k, v = heads(q), heads(k), heads(v)
    att = jnp.einsum("bhqd,bhkd->bhqk", q, k) / math.sqrt(hd)
    mask = jnp.tril(jnp.ones((T, T), bool))
    att = jnp.where(mask, att, -jnp.inf)
    p = jax.nn.softmax(att, axis=-1)
    y = jnp.einsum("bhqk,bhkd->bhqd", p, v)
    y = y.transpose(0, 2, 1, 3).reshape(B, T, C)
    x1 = x + y @ wpr + bpr[0]

    h2 = _layernorm(x1, ln2g[0], ln2b[0])
    f = h2 @ wfc + bfc[0]
    g = _gelu_tanh(f)
    return x1 + g @ wp2 + bp2[0]


if __name__ == "__main__":
    B, T, C, n_head = 2, 8, 32, 4   # block_size = T = 8, head_dim = 8

    key = jax.random.PRNGKey(0)
    kx, kp = jax.random.split(key)
    x = jax.random.normal(kx, (B, T, C), jnp.float32)

    raw_params = init_params(kp, C)                       # PyTorch-equivalent params
    kernel_params = prepare_block_params(raw_params, n_head)  # scale folded into wqkv

    out = jax.block_until_ready(block_forward(x, kernel_params, n_head))

    ref = block_reference(x, raw_params, n_head)
    assert out.shape == (B, T, C)
    err = jnp.max(jnp.abs(out - ref))
    # bf16 MXU operands + bf16 exp (v6e/v7x) + approx reciprocal -> looser tolerance.
    assert jnp.allclose(out, ref, atol=2e-2, rtol=2e-2), f"max abs err {err}"

    print("KERNEL_OK")
</pallas_src>

<mosaic_0001>
module attributes {stable_mosaic.version = 11 : i64} {
  func.func @block_kernel(%arg0: i32, %arg1: memref<1x8x32xf32, #tpu.memory_space<vmem>>, %arg2: memref<1x32xf32, #tpu.memory_space<vmem>>, %arg3: memref<1x32xf32, #tpu.memory_space<vmem>>, %arg4: memref<32x96xbf16, #tpu.memory_space<vmem>>, %arg5: memref<1x96xf32, #tpu.memory_space<vmem>>, %arg6: memref<32x32xbf16, #tpu.memory_space<vmem>>, %arg7: memref<1x32xf32, #tpu.memory_space<vmem>>, %arg8: memref<1x32xf32, #tpu.memory_space<vmem>>, %arg9: memref<1x32xf32, #tpu.memory_space<vmem>>, %arg10: memref<32x128xbf16, #tpu.memory_space<vmem>>, %arg11: memref<1x128xf32, #tpu.memory_space<vmem>>, %arg12: memref<128x32xbf16, #tpu.memory_space<vmem>>, %arg13: memref<1x32xf32, #tpu.memory_space<vmem>>, %arg14: memref<1x8x32xf32, #tpu.memory_space<vmem>>) attributes {dimension_semantics = [#tpu.dimension_semantics<parallel>], iteration_bounds = array<i64: 2>, scalar_prefetch = 0 : i64, scratch_operands = 0 : i64, tpu.core_type = #tpu.core_type<tc>, window_params = [{transform_indices = @transform_0, window_bounds = array<i64: 1, 8, 32>}, {pipeline_mode = #tpu.pipeline_mode<synchronous>, transform_indices = @transform_1, window_bounds = array<i64: 1, 32>}, {pipeline_mode = #tpu.pipeline_mode<synchronous>, transform_indices = @transform_2, window_bounds = array<i64: 1, 32>}, {pipeline_mode = #tpu.pipeline_mode<synchronous>, transform_indices = @transform_3, window_bounds = array<i64: 32, 96>}, {pipeline_mode = #tpu.pipeline_mode<synchronous>, transform_indices = @transform_4, window_bounds = array<i64: 1, 96>}, {pipeline_mode = #tpu.pipeline_mode<synchronous>, transform_indices = @transform_5, window_bounds = array<i64: 32, 32>}, {pipeline_mode = #tpu.pipeline_mode<synchronous>, transform_indices = @transform_6, window_bounds = array<i64: 1, 32>}, {pipeline_mode = #tpu.pipeline_mode<synchronous>, transform_indices = @transform_7, window_bounds = array<i64: 1, 32>}, {pipeline_mode = #tpu.pipeline_mode<synchronous>, transform_indices = @transform_8, window_bounds = array<i64: 1, 32>}, {pipeline_mode = #tpu.pipeline_mode<synchronous>, transform_indices = @transform_9, window_bounds = array<i64: 32, 128>}, {pipeline_mode = #tpu.pipeline_mode<synchronous>, transform_indices = @transform_10, window_bounds = array<i64: 1, 128>}, {pipeline_mode = #tpu.pipeline_mode<synchronous>, transform_indices = @transform_11, window_bounds = array<i64: 128, 32>}, {pipeline_mode = #tpu.pipeline_mode<synchronous>, transform_indices = @transform_12, window_bounds = array<i64: 1, 32>}, {transform_indices = @transform_13, window_bounds = array<i64: 1, 8, 32>}]} {
    %c0 = arith.constant 0 : index
    %c0_0 = arith.constant 0 : index
    %c0_1 = arith.constant 0 : index
    %0 = vector.load %arg1[%c0, %c0_0, %c0_1] : memref<1x8x32xf32, #tpu.memory_space<vmem>>, vector<1x8x32xf32>
    %1 = vector.shape_cast %0 : vector<1x8x32xf32> to vector<8x32xf32>
    %c0_2 = arith.constant 0 : index
    %c0_3 = arith.constant 0 : index
    %2 = vector.load %arg2[%c0_2, %c0_3] : memref<1x32xf32, #tpu.memory_space<vmem>>, vector<1x32xf32>
    %3 = vector.shape_cast %2 : vector<1x32xf32> to vector<32xf32>
    %c0_4 = arith.constant 0 : index
    %c0_5 = arith.constant 0 : index
    %4 = vector.load %arg3[%c0_4, %c0_5] : memref<1x32xf32, #tpu.memory_space<vmem>>, vector<1x32xf32>
    %5 = vector.shape_cast %4 : vector<1x32xf32> to vector<32xf32>
    %cst = arith.constant dense<0.000000e+00> : vector<8xf32>
    %6 = vector.multi_reduction <add>, %1, %cst [1] : vector<8x32xf32> to vector<8xf32>
    %7 = vector.shape_cast %6 : vector<8xf32> to vector<8x1xf32>
    %cst_6 = arith.constant 3.200000e+01 : f32
    %8 = vector.broadcast %cst_6 : f32 to vector<8x1xf32>
    %9 = arith.divf %7, %8 : vector<8x1xf32>
    %10 = vector.broadcast %9 : vector<8x1xf32> to vector<8x32xf32>
    %11 = arith.subf %1, %10 : vector<8x32xf32>
    %12 = arith.mulf %11, %11 : vector<8x32xf32>
    %cst_7 = arith.constant dense<0.000000e+00> : vector<8xf32>
    %13 = vector.multi_reduction <add>, %12, %cst_7 [1] : vector<8x32xf32> to vector<8xf32>
    %14 = vector.shape_cast %13 : vector<8xf32> to vector<8x1xf32>
    %cst_8 = arith.constant 3.200000e+01 : f32
    %15 = vector.broadcast %cst_8 : f32 to vector<8x1xf32>
    %16 = arith.divf %14, %15 : vector<8x1xf32>
    %17 = vector.broadcast %9 : vector<8x1xf32> to vector<8x32xf32>
    %18 = arith.subf %1, %17 : vector<8x32xf32>
    %cst_9 = arith.constant 9.99999974E-6 : f32
    %19 = vector.broadcast %cst_9 : f32 to vector<8x1xf32>
    %20 = arith.addf %16, %19 : vector<8x1xf32>
    %21 = math.rsqrt %20 : vector<8x1xf32>
    %22 = vector.broadcast %21 : vector<8x1xf32> to vector<8x32xf32>
    %23 = arith.mulf %18, %22 : vector<8x32xf32>
    %24 = vector.shape_cast %3 : vector<32xf32> to vector<1x32xf32>
    %25 = vector.broadcast %24 : vector<1x32xf32> to vector<8x32xf32>
    %26 = arith.mulf %23, %25 : vector<8x32xf32>
    %27 = vector.shape_cast %5 : vector<32xf32> to vector<1x32xf32>
    %28 = vector.broadcast %27 : vector<1x32xf32> to vector<8x32xf32>
    %29 = arith.addf %26, %28 : vector<8x32xf32>
    %30 = arith.truncf %29 : vector<8x32xf32> to vector<8x32xbf16>
    %c0_10 = arith.constant 0 : index
    %c0_11 = arith.constant 0 : index
    %31 = vector.load %arg4[%c0_10, %c0_11] : memref<32x96xbf16, #tpu.memory_space<vmem>>, vector<32x96xbf16>
    %cst_12 = arith.constant dense<0.000000e+00> : vector<8x96xf32>
    %32 = tpu.matmul %30, %31, %cst_12 {dimension_numbers = #tpu.dot_dimension_numbers<[1], [0], [0], [1], [0, 0, 1, 1], [], []>} : vector<8x32xbf16>, vector<32x96xbf16>, vector<8x96xf32> -> vector<8x96xf32>
    %c0_13 = arith.constant 0 : index
    %c0_14 = arith.constant 0 : index
    %33 = vector.load %arg5[%c0_13, %c0_14] : memref<1x96xf32, #tpu.memory_space<vmem>>, vector<1x96xf32>
    %34 = vector.shape_cast %33 : vector<1x96xf32> to vector<96xf32>
    %35 = vector.shape_cast %34 : vector<96xf32> to vector<1x96xf32>
    %36 = vector.broadcast %35 : vector<1x96xf32> to vector<8x96xf32>
    %37 = arith.addf %32, %36 : vector<8x96xf32>
    %38 = vector.extract_strided_slice %37 {offsets = [0, 0], sizes = [8, 32], strides = [1, 1]} : vector<8x96xf32> to vector<8x32xf32>
    %39 = vector.shape_cast %38 : vector<8x32xf32> to vector<1x8x4x8xf32>
    %40 = tpu.transpose %39, [0, 2, 1, 3] : vector<1x8x4x8xf32> -> vector<1x4x8x8xf32>
    %41 = vector.shape_cast %40 : vector<1x4x8x8xf32> to vector<4x8x8xf32>
    %42 = arith.truncf %41 : vector<4x8x8xf32> to vector<4x8x8xbf16>
    %43 = vector.extract_strided_slice %37 {offsets = [0, 32], sizes = [8, 32], strides = [1, 1]} : vector<8x96xf32> to vector<8x32xf32>
    %44 = vector.shape_cast %43 : vector<8x32xf32> to vector<1x8x4x8xf32>
    %45 = tpu.transpose %44, [0, 2, 1, 3] : vector<1x8x4x8xf32> -> vector<1x4x8x8xf32>
    %46 = vector.shape_cast %45 : vector<1x4x8x8xf32> to vector<4x8x8xf32>
    %47 = arith.truncf %46 : vector<4x8x8xf32> to vector<4x8x8xbf16>
    %48 = vector.extract_strided_slice %37 {offsets = [0, 64], sizes = [8, 32], strides = [1, 1]} : vector<8x96xf32> to vector<8x32xf32>
    %49 = vector.shape_cast %48 : vector<8x32xf32> to vector<1x8x4x8xf32>
    %50 = tpu.transpose %49, [0, 2, 1, 3] : vector<1x8x4x8xf32> -> vector<1x4x8x8xf32>
    %51 = vector.shape_cast %50 : vector<1x4x8x8xf32> to vector<4x8x8xf32>
    %52 = arith.truncf %51 : vector<4x8x8xf32> to vector<4x8x8xbf16>
    "tpu.trace_start"() <{level = 10 : i32, message = "htd,hsd->hts"}> : () -> ()
    %cst_15 = arith.constant dense<0.000000e+00> : vector<4x8x8xf32>
    %53 = tpu.matmul %42, %47, %cst_15 {dimension_numbers = #tpu.dot_dimension_numbers<[2], [2], [1], [1], [0, 0, 0, 1, 1, 1], [0], [0]>} : vector<4x8x8xbf16>, vector<4x8x8xbf16>, vector<4x8x8xf32> -> vector<4x8x8xf32>
    "tpu.trace_stop"() : () -> ()
    %54 = tpu.iota {dimensions = array<i32: 0>} : vector<8x8xi32>
    %55 = tpu.iota {dimensions = array<i32: 1>} : vector<8x8xi32>
    %56 = arith.cmpi sge, %54, %55 : vector<8x8xi32>
    %cst_16 = arith.constant 0xFF800000 : f32
    %57 = vector.shape_cast %56 : vector<8x8xi1> to vector<1x8x8xi1>
    %58 = vector.broadcast %57 : vector<1x8x8xi1> to vector<4x8x8xi1>
    %59 = vector.broadcast %cst_16 : f32 to vector<4x8x8xf32>
    %60 = arith.select %58, %53, %59 : vector<4x8x8xi1>, vector<4x8x8xf32>
    %cst_17 = arith.constant dense<0xFF800000> : vector<4x8xf32>
    %61 = vector.multi_reduction <maximumf>, %60, %cst_17 [2] : vector<4x8x8xf32> to vector<4x8xf32>
    %62 = vector.shape_cast %61 : vector<4x8xf32> to vector<4x8x1xf32>
    %63 = vector.broadcast %62 : vector<4x8x1xf32> to vector<4x8x8xf32>
    %64 = arith.subf %60, %63 : vector<4x8x8xf32>
    %65 = math.exp %64 : vector<4x8x8xf32>
    %cst_18 = arith.constant dense<0.000000e+00> : vector<4x8xf32>
    %66 = vector.multi_reduction <add>, %65, %cst_18 [2] : vector<4x8x8xf32> to vector<4x8xf32>
    %67 = vector.shape_cast %66 : vector<4x8xf32> to vector<4x8x1xf32>
    %68 = tpu.reciprocal %67 {approx = true} : vector<4x8x1xf32> -> vector<4x8x1xf32>
    %69 = vector.broadcast %68 : vector<4x8x1xf32> to vector<4x8x8xf32>
    %70 = arith.mulf %65, %69 : vector<4x8x8xf32>
    %71 = arith.truncf %70 : vector<4x8x8xf32> to vector<4x8x8xbf16>
    "tpu.trace_start"() <{level = 10 : i32, message = "hts,hsd->htd"}> : () -> ()
    %cst_19 = arith.constant dense<0.000000e+00> : vector<4x8x8xf32>
    %72 = tpu.matmul %71, %52, %cst_19 {dimension_numbers = #tpu.dot_dimension_numbers<[2], [1], [1], [2], [0, 0, 0, 1, 1, 2], [0], [0]>} : vector<4x8x8xbf16>, vector<4x8x8xbf16>, vector<4x8x8xf32> -> vector<4x8x8xf32>
    "tpu.trace_stop"() : () -> ()
    %73 = vector.shape_cast %72 : vector<4x8x8xf32> to vector<1x4x8x8xf32>
    %74 = tpu.transpose %73, [0, 2, 1, 3] : vector<1x4x8x8xf32> -> vector<1x8x4x8xf32>
    %75 = vector.shape_cast %74 : vector<1x8x4x8xf32> to vector<8x32xf32>
    %76 = arith.truncf %75 : vector<8x32xf32> to vector<8x32xbf16>
    %c0_20 = arith.constant 0 : index
    %c0_21 = arith.constant 0 : index
    %77 = vector.load %arg6[%c0_20, %c0_21] : memref<32x32xbf16, #tpu.memory_space<vmem>>, vector<32x32xbf16>
    %cst_22 = arith.constant dense<0.000000e+00> : vector<8x32xf32>
    %78 = tpu.matmul %76, %77, %cst_22 {dimension_numbers = #tpu.dot_dimension_numbers<[1], [0], [0], [1], [0, 0, 1, 1], [], []>} : vector<8x32xbf16>, vector<32x32xbf16>, vector<8x32xf32> -> vector<8x32xf32>
    %c0_23 = arith.constant 0 : index
    %c0_24 = arith.constant 0 : index
    %79 = vector.load %arg7[%c0_23, %c0_24] : memref<1x32xf32, #tpu.memory_space<vmem>>, vector<1x32xf32>
    %80 = vector.shape_cast %79 : vector<1x32xf32> to vector<32xf32>
    %81 = vector.shape_cast %80 : vector<32xf32> to vector<1x32xf32>
    %82 = vector.broadcast %81 : vector<1x32xf32> to vector<8x32xf32>
    %83 = arith.addf %78, %82 : vector<8x32xf32>
    %84 = arith.addf %1, %83 : vector<8x32xf32>
    %c0_25 = arith.constant 0 : index
    %c0_26 = arith.constant 0 : index
    %85 = vector.load %arg8[%c0_25, %c0_26] : memref<1x32xf32, #tpu.memory_space<vmem>>, vector<1x32xf32>
    %86 = vector.shape_cast %85 : vector<1x32xf32> to vector<32xf32>
    %c0_27 = arith.constant 0 : index
    %c0_28 = arith.constant 0 : index
    %87 = vector.load %arg9[%c0_27, %c0_28] : memref<1x32xf32, #tpu.memory_space<vmem>>, vector<1x32xf32>
    %88 = vector.shape_cast %87 : vector<1x32xf32> to vector<32xf32>
    %cst_29 = arith.constant dense<0.000000e+00> : vector<8xf32>
    %89 = vector.multi_reduction <add>, %84, %cst_29 [1] : vector<8x32xf32> to vector<8xf32>
    %90 = vector.shape_cast %89 : vector<8xf32> to vector<8x1xf32>
    %cst_30 = arith.constant 3.200000e+01 : f32
    %91 = vector.broadcast %cst_30 : f32 to vector<8x1xf32>
    %92 = arith.divf %90, %91 : vector<8x1xf32>
    %93 = vector.broadcast %92 : vector<8x1xf32> to vector<8x32xf32>
    %94 = arith.subf %84, %93 : vector<8x32xf32>
    %95 = arith.mulf %94, %94 : vector<8x32xf32>
    %cst_31 = arith.constant dense<0.000000e+00> : vector<8xf32>
    %96 = vector.multi_reduction <add>, %95, %cst_31 [1] : vector<8x32xf32> to vector<8xf32>
    %97 = vector.shape_cast %96 : vector<8xf32> to vector<8x1xf32>
    %cst_32 = arith.constant 3.200000e+01 : f32
    %98 = vector.broadcast %cst_32 : f32 to vector<8x1xf32>
    %99 = arith.divf %97, %98 : vector<8x1xf32>
    %100 = vector.broadcast %92 : vector<8x1xf32> to vector<8x32xf32>
    %101 = arith.subf %84, %100 : vector<8x32xf32>
    %cst_33 = arith.constant 9.99999974E-6 : f32
    %102 = vector.broadcast %cst_33 : f32 to vector<8x1xf32>
    %103 = arith.addf %99, %102 : vector<8x1xf32>
    %104 = math.rsqrt %103 : vector<8x1xf32>
    %105 = vector.broadcast %104 : vector<8x1xf32> to vector<8x32xf32>
    %106 = arith.mulf %101, %105 : vector<8x32xf32>
    %107 = vector.shape_cast %86 : vector<32xf32> to vector<1x32xf32>
    %108 = vector.broadcast %107 : vector<1x32xf32> to vector<8x32xf32>
    %109 = arith.mulf %106, %108 : vector<8x32xf32>
    %110 = vector.shape_cast %88 : vector<32xf32> to vector<1x32xf32>
    %111 = vector.broadcast %110 : vector<1x32xf32> to vector<8x32xf32>
    %112 = arith.addf %109, %111 : vector<8x32xf32>
    %113 = arith.truncf %112 : vector<8x32xf32> to vector<8x32xbf16>
    %c0_34 = arith.constant 0 : index
    %c0_35 = arith.constant 0 : index
    %114 = vector.load %arg10[%c0_34, %c0_35] : memref<32x128xbf16, #tpu.memory_space<vmem>>, vector<32x128xbf16>
    %cst_36 = arith.constant dense<0.000000e+00> : vector<8x128xf32>
    %115 = tpu.matmul %113, %114, %cst_36 {dimension_numbers = #tpu.dot_dimension_numbers<[1], [0], [0], [1], [0, 0, 1, 1], [], []>} : vector<8x32xbf16>, vector<32x128xbf16>, vector<8x128xf32> -> vector<8x128xf32>
    %c0_37 = arith.constant 0 : index
    %c0_38 = arith.constant 0 : index
    %116 = vector.load %arg11[%c0_37, %c0_38] : memref<1x128xf32, #tpu.memory_space<vmem>>, vector<1x128xf32>
    %117 = vector.shape_cast %116 : vector<1x128xf32> to vector<128xf32>
    %118 = vector.shape_cast %117 : vector<128xf32> to vector<1x128xf32>
    %119 = vector.broadcast %118 : vector<1x128xf32> to vector<8x128xf32>
    %120 = arith.addf %115, %119 : vector<8x128xf32>
    %cst_39 = arith.constant 5.000000e-01 : f32
    %121 = vector.broadcast %cst_39 : f32 to vector<8x128xf32>
    %122 = arith.mulf %121, %120 : vector<8x128xf32>
    %cst_40 = arith.constant 4.471500e-02 : f32
    %123 = vector.broadcast %cst_40 : f32 to vector<8x128xf32>
    %124 = arith.mulf %123, %120 : vector<8x128xf32>
    %125 = arith.mulf %124, %120 : vector<8x128xf32>
    %126 = arith.mulf %125, %120 : vector<8x128xf32>
    %127 = arith.addf %120, %126 : vector<8x128xf32>
    %cst_41 = arith.constant 0.797884583 : f32
    %128 = vector.broadcast %cst_41 : f32 to vector<8x128xf32>
    %129 = arith.mulf %128, %127 : vector<8x128xf32>
    %130 = math.tanh %129 : vector<8x128xf32>
    %cst_42 = arith.constant 1.000000e+00 : f32
    %131 = vector.broadcast %cst_42 : f32 to vector<8x128xf32>
    %132 = arith.addf %131, %130 : vector<8x128xf32>
    %133 = arith.mulf %122, %132 : vector<8x128xf32>
    %134 = arith.truncf %133 : vector<8x128xf32> to vector<8x128xbf16>
    %c0_43 = arith.constant 0 : index
    %c0_44 = arith.constant 0 : index
    %135 = vector.load %arg12[%c0_43, %c0_44] : memref<128x32xbf16, #tpu.memory_space<vmem>>, vector<128x32xbf16>
    %cst_45 = arith.constant dense<0.000000e+00> : vector<8x32xf32>
    %136 = tpu.matmul %134, %135, %cst_45 {dimension_numbers = #tpu.dot_dimension_numbers<[1], [0], [0], [1], [0, 0, 1, 1], [], []>} : vector<8x128xbf16>, vector<128x32xbf16>, vector<8x32xf32> -> vector<8x32xf32>
    %c0_46 = arith.constant 0 : index
    %c0_47 = arith.constant 0 : index
    %137 = vector.load %arg13[%c0_46, %c0_47] : memref<1x32xf32, #tpu.memory_space<vmem>>, vector<1x32xf32>
    %138 = vector.shape_cast %137 : vector<1x32xf32> to vector<32xf32>
    %139 = vector.shape_cast %138 : vector<32xf32> to vector<1x32xf32>
    %140 = vector.broadcast %139 : vector<1x32xf32> to vector<8x32xf32>
    %141 = arith.addf %136, %140 : vector<8x32xf32>
    %142 = arith.addf %84, %141 : vector<8x32xf32>
    %143 = vector.shape_cast %142 : vector<8x32xf32> to vector<1x8x32xf32>
    %c0_48 = arith.constant 0 : index
    %c0_49 = arith.constant 0 : index
    %c0_50 = arith.constant 0 : index
    %144 = vector.load %arg14[%c0_48, %c0_49, %c0_50] : memref<1x8x32xf32, #tpu.memory_space<vmem>>, vector<1x8x32xf32>
    tpu.vector_store %arg14[%c0_48, %c0_49, %c0_50], %143 {strides = array<i32>} : memref<1x8x32xf32, #tpu.memory_space<vmem>>, vector<1x8x32xf32>,
    return
  }
  func.func @transform_0(%arg0: i32) -> (i32, i32, i32) {
    %c0_i32 = arith.constant 0 : i32
    %c0_i32_0 = arith.constant 0 : i32
    %c0_i32_1 = arith.constant 0 : i32
    return %arg0, %c0_i32, %c0_i32_0 : i32, i32, i32
  }
  func.func @transform_1(%arg0: i32) -> (i32, i32) {
    %c0_i32 = arith.constant 0 : i32
    %c0_i32_0 = arith.constant 0 : i32
    %c0_i32_1 = arith.constant 0 : i32
    return %c0_i32, %c0_i32_0 : i32, i32
  }
  func.func @transform_2(%arg0: i32) -> (i32, i32) {
    %c0_i32 = arith.constant 0 : i32
    %c0_i32_0 = arith.constant 0 : i32
    %c0_i32_1 = arith.constant 0 : i32
    return %c0_i32, %c0_i32_0 : i32, i32
  }
  func.func @transform_3(%arg0: i32) -> (i32, i32) {
    %c0_i32 = arith.constant 0 : i32
    %c0_i32_0 = arith.constant 0 : i32
    %c0_i32_1 = arith.constant 0 : i32
    return %c0_i32, %c0_i32_0 : i32, i32
  }
  func.func @transform_4(%arg0: i32) -> (i32, i32) {
    %c0_i32 = arith.constant 0 : i32
    %c0_i32_0 = arith.constant 0 : i32
    %c0_i32_1 = arith.constant 0 : i32
    return %c0_i32, %c0_i32_0 : i32, i32
  }
  func.func @transform_5(%arg0: i32) -> (i32, i32) {
    %c0_i32 = arith.constant 0 : i32
    %c0_i32_0 = arith.constant 0 : i32
    %c0_i32_1 = arith.constant 0 : i32
    return %c0_i32, %c0_i32_0 : i32, i32
  }
  func.func @transform_6(%arg0: i32) -> (i32, i32) {
    %c0_i32 = arith.constant 0 : i32
    %c0_i32_0 = arith.constant 0 : i32
    %c0_i32_1 = arith.constant 0 : i32
    return %c0_i32, %c0_i32_0 : i32, i32
  }
  func.func @transform_7(%arg0: i32) -> (i32, i32) {
    %c0_i32 = arith.constant 0 : i32
    %c0_i32_0 = arith.constant 0 : i32
    %c0_i32_1 = arith.constant 0 : i32
    return %c0_i32, %c0_i32_0 : i32, i32
  }
  func.func @transform_8(%arg0: i32) -> (i32, i32) {
    %c0_i32 = arith.constant 0 : i32
    %c0_i32_0 = arith.constant 0 : i32
    %c0_i32_1 = arith.constant 0 : i32
    return %c0_i32, %c0_i32_0 : i32, i32
  }
  func.func @transform_9(%arg0: i32) -> (i32, i32) {
    %c0_i32 = arith.constant 0 : i32
    %c0_i32_0 = arith.constant 0 : i32
    %c0_i32_1 = arith.constant 0 : i32
    return %c0_i32, %c0_i32_0 : i32, i32
  }
  func.func @transform_10(%arg0: i32) -> (i32, i32) {
    %c0_i32 = arith.constant 0 : i32
    %c0_i32_0 = arith.constant 0 : i32
    %c0_i32_1 = arith.constant 0 : i32
    return %c0_i32, %c0_i32_0 : i32, i32
  }
  func.func @transform_11(%arg0: i32) -> (i32, i32) {
    %c0_i32 = arith.constant 0 : i32
    %c0_i32_0 = arith.constant 0 : i32
    %c0_i32_1 = arith.constant 0 : i32
    return %c0_i32, %c0_i32_0 : i32, i32
  }
  func.func @transform_12(%arg0: i32) -> (i32, i32) {
    %c0_i32 = arith.constant 0 : i32
    %c0_i32_0 = arith.constant 0 : i32
    %c0_i32_1 = arith.constant 0 : i32
    return %c0_i32, %c0_i32_0 : i32, i32
  }
  func.func @transform_13(%arg0: i32) -> (i32, i32, i32) {
    %c0_i32 = arith.constant 0 : i32
    %c0_i32_0 = arith.constant 0 : i32
    %c0_i32_1 = arith.constant 0 : i32
    return %arg0, %c0_i32, %c0_i32_0 : i32, i32, i32
  }
}

</mosaic_0001>

<bundles_post_ra>
// kernel: tpu_custom_call.1
= control target key start
LH: loop header
LB: loop body
LE: loop exit
PB: predicated region body
PF: predicated region fallthrough
CT: control target
= control target key end

     0   :  { %s2233_s0 = inlined_call_operand.vmem [shape: f32[2,8,32], index: 0, kind: input, shape index: {}]   ;;  %s2234_s1 = inlined_call_operand.vmem [shape: f32[1,32], index: 1, kind: input, shape index: {}]   ;;  %s2235_s2 = inlined_call_operand.vmem [shape: f32[1,32], index: 2, kind: input, shape index: {}]   ;;  %s2236_s3 = inlined_call_operand.vmem [shape: bf16[32,96], index: 3, kind: input, shape index: {}]   ;;  %s2237_s4 = inlined_call_operand.vmem [shape: f32[1,96], index: 4, kind: input, shape index: {}]   ;;  %s2238_s5 = inlined_call_operand.vmem [shape: bf16[32,32], index: 5, kind: input, shape index: {}]   ;;  %s2239_s6 = inlined_call_operand.vmem [shape: f32[1,32], index: 6, kind: input, shape index: {}]   ;;  %s2240_s7 = inlined_call_operand.vmem [shape: f32[1,32], index: 7, kind: input, shape index: {}]   ;;  %s2241_s8 = inlined_call_operand.vmem [shape: f32[1,32], index: 8, kind: input, shape index: {}]   ;;  %s2242_s9 = inlined_call_operand.vmem [shape: bf16[32,128], index: 9, kind: input, shape index: {}]   ;;  %s2243_s10 = inlined_call_operand.vmem [shape: f32[1,128], index: 10, kind: input, shape index: {}]   ;;  %s2244_s11 = inlined_call_operand.vmem [shape: bf16[128,32], index: 11, kind: input, shape index: {}]   ;;  %s2245_s12 = inlined_call_operand.vmem [shape: f32[1,32], index: 12, kind: input, shape index: {}]   ;;  %s2246_s13 = inlined_call_operand.hbm [shape: f32[2,8,32], index: 13, kind: output, shape index: {}]  }
   0x1   :  { %2247 = sst [smem:[#allocation5_spill]] %s2233_s0 }
   0x2   :  { %2248 = sst [smem:[#allocation6_spill]] %s2234_s1 }
   0x3   :  { %2249 = sst [smem:[#allocation7_spill]] %s2235_s2 }
   0x4   :  { %2250 = sst [smem:[#allocation8_spill]] %s2236_s3 }
   0x5   :  { %18 = vsyncpa [#allocation3], 0 }
   0x6   :  { %20 = vsyncpa [#allocation3 + $0x1], 0  ;;  %s1845_s25 = smov 0   ;;  %s1847_s26 = smov 0  }
   0x7   :  { %s1849_s27 = smov 0   ;;  %s1851_s28 = smov 0  }
   0x8 LB: > { %s1866_s29 = sadd.s32 4294967295, %s1762_s28   ;;  %s1507_s30 = sadd.s32 4294967294, %s1762_s28   ;;  %s1762_s28 = sphi %s1851_s28, %s2260_s28   ;;  %s1758_s27 = sphi %s1849_s27, %s2259_s27   ;;  %s1754_s26 = sphi %s1847_s26, %s2258_s26   ;;  %s1750_s25 = sphi %s1845_s25, %s2257_s25  }
   0x9   : > { %s1870_s14 = sadd.s32 1, %s1762_s28   ;;  %s311_s15 = sadd.s32 1, %s1758_s27 }
   0xa   : > { %s308_s16 = ssub.s32 %s1762_s28, %s1870_s14  ;;  %p321_p0 = scmp.ne.s32.totalorder %s1758_s27, %s1754_s26 }
   0xb   : > { %p309_p1 = scmp.eq.s32.totalorder %s308_s16, 0  ;;  %p322_p2 = scmp.eq.s32.totalorder %s1866_s29, 1 }
   0xc   : > { %p327_p3 = scmp.ne.s32.totalorder %s1754_s26, %s1750_s25  ;;  %p328_p4 = scmp.eq.s32.totalorder %s1507_s30, 1 }
   0xd   : > { %s1881_s17 = scalar_select %p309_p1, %s1758_s27, %s311_s15  }
   0xe   : > { %p1883_p5 = por %p322_p2, %p321_p0  ;;  %p1887_p6 = por %p328_p4, %p327_p3 }
   0xf   : > { %p1510_p7 = scmp.ge.s32.totalorder %s1762_s28, 1  ;;  %p389_p8 = scmp.lt.s32.totalorder %s1762_s28, 3 }
  0x11   : > { %p390_p9 = pnand %p1510_p7, %p389_p8 }
  0x12   : > { %p432_p10 = scmp.lt.s32.totalorder (!%p390_p9), %s1866_s29, 1  ;;  %s2253_s0 = sld [smem:[#allocation5_spill]] (!%p390_p9) }
  0x13   : > { %393 = sbr.rel (%p390_p9) target bundleno = 2079 (0x81f), region = 72  ;;  %s2254_s3 = sld [smem:[#allocation8_spill]] (!%p390_p9) }
  0x14   : > { %s2255_s1 = sld [smem:[#allocation6_spill]] (!%p390_p9)  ;;  %s1765_s16 = smov (!%p390_p9), 104  }
  0x15   : > { %s2256_s2 = sld [smem:[#allocation7_spill]] (!%p390_p9)  ;;  %s1768_s22 = smov (!%p390_p9), 96  }
  0x16   : > { %s1771_s23 = smov (!%p390_p9), 64   ;;  %s1773_s30 = smov (!%p390_p9), 16  }
  0x17   : > { %s1774_s15 = smov (!%p390_p9), 24  }
  0x18   : > { %s433_s20 = scalar_select %p432_p10, %s1866_s29, 1  ;;  %vm440_vm0 = vcmask 261120   ;;  %v1764_v2 = vmov 32.0   ;;  %v1670_v32 = vld [vmem:[%s2237_s4] ss:$0 sm:$0xff]  ;;  %vm526_vm5 = vcmask 1047556  }
  0x19   : > { %1676 = vrcp.f32 %v1764_v2  ;;  %v1585_v14 = vld [vmem:[%s2254_s3 + $0x8] sm:$0xff]  ;;  %v1584_v15 = vld [vmem:[%s2254_s3] sm:$0xff]  ;;  %v1769_v42 = vmov 1983009808   ;;  %v1770_v56 = vmov 1934713408  }
  0x1a   : > { %s1512_s21 = sshll.u32 %s433_s20, 3  ;;  %508 = vmatpush.bf16.msra.mxu0 %v1585_v14  ;;  %v1668_v25 = vld [vmem:[%s2255_s1] ss:$0 sm:$0xff]  ;;  %s1766_s20 = smov 120   ;;  %v531_v43 = vunpack.c.l.s4 %v1769_v42  ;;  %v555_v57 = vunpack.c.l.s4 %v1770_v56  ;;  %vm892_vm6 = vcmask 64512   ;;  %vm1031_vm8 = vcmask 1043456  }
  0x1b   : > { %s435_s24 = scalar_lea.vmem %s2253_s0, %s1512_s21  ;;  %v1669_v28 = vld [vmem:[%s2256_s2] ss:$0 sm:$0xff]  ;;  %s1767_s21 = smov 112   ;;  %vm1228_vm9 = vcmask 130048   ;;  %vm1230_vm10 = vcmask 195584  }
  0x1c   : > { %v1898_v0 = vld [vmem:[%s435_s24] sm:$0xff]  ;;  %v1932_v47 = vunpack.c.0.s8 %v531_v43  ;;  %v1942_v62 = vunpack.c.0.s8 %v555_v57  ;;  %s1772_s24 = smov 8   ;;  %s429_s0 = sand.u32 1, %s1754_s26  }
  0x1d   : > { %v441_v1 = vsel %vm440_vm0, %v1898_v0, 0.0  ;;  %s1511_s1 = sshll.u32 %s429_s0, 3 }
  0x1e   : > { %442 = vadd.xlane.f32.xlu0 %v441_v1  ;;  %509 = vmatpush.bf16.msra.mxu0 %v1584_v15 }
  0x1f   : > { %v1677_v3 = vpop.eup %1676 }
  0x20   : > { %v445_v4 = vmul.f32 32.0, %v1677_v3  ;;  %vm449_vm1 = vweird.f32 %v1677_v3 }
  0x22   : > { %v446_v5 = vsub.f32 1.0, %v445_v4 }
  0x24   : > { %v447_v6 = vmul.f32 %v1677_v3, %v446_v5 }
  0x26   : > { %v448_v7 = vadd.f32 %v1677_v3, %v447_v6 }
  0x28   : > { %v1902_v8 = vsel %vm449_vm1, %v1677_v3, %v448_v7 }
  0x91   : > { %v443_v9 = vpop.xlane.xlu0 %442 }
  0x92   : > { %v451_v10 = vmul.f32 %v1902_v8, %v443_v9 }
  0x94   : > { %v452_v11 = vsub.f32 %v1898_v0, %v451_v10 }
  0x96   : > { %v453_v12 = vmul.f32 %v452_v11, %v452_v11 }
  0x98   : > { %v454_v13 = vsel %vm440_vm0, %v453_v12, 0.0 }
  0x99   : > { %455 = vadd.xlane.f32.xlu0 %v454_v13 }
 0x10c   : > { %v456_v16 = vpop.xlane.xlu0 %455 }
 0x10d   : > { %v457_v17 = vmul.f32 %v456_v16, %v1902_v8 }
 0x10f   : > { %v458_v18 = vadd.f32 1e-05, %v457_v17 }
 0x111   : > { %1678 = vrsqrt.f32 %v458_v18  ;;  %vm465_vm3 = vweird.f32 %v458_v18 }
 0x117   : > { %v1679_v19 = vpop.eup %1678 }
 0x118   : > { %v460_v20 = vmul.f32 %v1679_v19, %v458_v18  ;;  %vm466_vm2 = vweird.f32 %v1679_v19 }
 0x119   : > { %vm467_vm4 = vmor %vm465_vm3, %vm466_vm2 }
 0x11a   : > { %v461_v21 = vmul.f32 %v1679_v19, %v460_v20 }
 0x11c   : > { %v462_v22 = vmul.f32 0.5, %v461_v21 }
 0x11e   : > { %v463_v23 = vsub.f32 1.5, %v462_v22 }
 0x120   : > { %v464_v24 = vmul.f32 %v1679_v19, %v463_v23 }
 0x122   : > { %v468_v26 = vsel %vm467_vm4, %v1679_v19, %v464_v24 }
 0x123   : > { %v469_v27 = vmul.f32 %v468_v26, %v452_v11 }
 0x125   : > { %v473_v29 = vmul.f32 %v1668_v25, %v469_v27 }
 0x127   : > { %v477_v30 = vadd.f32 %v1669_v28, %v473_v29 }
 0x129   : > { %v478_v31 = vpack.c.bf16 %v477_v30, %v477_v30 }
 0x12b   : > { %1521 = vmatmul.msk.bf16.vlgmr.msra.gmra.mxu0 %vm440_vm0, %v478_v31 }
 0x1a8   : > { %v511_v33 = vpop.f32.mrf.mxu0 }
 0x1a9   : > { %v512_v34 = vadd.f32 %v1670_v32, %v511_v33 }
 0x1ab   : > { %522 = vrot.lane.b32.xlu2 %v512_v34, %s1765_s16  ;;  %516 = vrot.lane.b32.xlu1 %v512_v34, %s1766_s20  ;;  %v528_v44 = vrot.slane %v512_v34, 4 }
 0x1b0   : > { %v513_v35 = vpop.f32.mrf.mxu0 }
 0x1b3   : > { %519 = vrot.lane.b32.xlu1 %v512_v34, %s1767_s21 }
 0x205   : > { %v523_v38 = vpop.permute.xlu2 %522 }
 0x206   : > { %v538_v51 = vrot.slane %v523_v38, 4 }
 0x21d   : > { %v517_v36 = vpop.permute.xlu1 %516 }
 0x21e   : > { %v1924_v37 = vpack.i.bf16 %v517_v36, %v512_v34  ;;  %v540_v48 = vrot.slane %v517_v36, 4  ;;  %v539_v52 = vsel %vm526_vm5, %v538_v51, %v517_v36 }
 0x21f   : > { %v545_v58 = vperm.slane %v539_v52, %v1932_v47 }
 0x220   : > { %1649 = vrot.lane.b32.xlu2 %v1924_v37, %s1768_s22  ;;  %v541_v53 = vsel %vm526_vm5, %v523_v38, %v540_v48 }
 0x221   : > { %v549_v59 = vperm.slane %v541_v53, %v1932_v47  ;;  %v550_v63 = vrot.slane %v545_v58, 4 }
 0x223   : > { %v562_v1 = vrot.slane %v549_v59, 4 }
 0x225   : > { %v520_v39 = vpop.permute.xlu1 %519 }
 0x226   : > { %v1927_v40 = vpack.i.bf16 %v523_v38, %v520_v39  ;;  %v525_v41 = vrot.slane %v520_v39, 4  ;;  %v529_v46 = vsel %vm526_vm5, %v520_v39, %v528_v44 }
 0x227   : > { %v537_v50 = vperm.slane %v529_v46, %v1932_v47 }
 0x228   : > { %1654 = vrot.lane.b32.xlu0 %v1927_v40, %s1768_s22  ;;  %v527_v45 = vsel %vm526_vm5, %v525_v41, %v512_v34 }
 0x229   : > { %v533_v49 = vperm.slane %v527_v45, %v1932_v47  ;;  %v564_v55 = vrot.slane %v537_v50, 4  ;;  %v563_v6 = vsel %vm526_vm5, %v562_v1, %v537_v50 }
 0x22a   : > { %v569_v11 = vperm.slane %v563_v6, %v1942_v62 }
 0x22b   : > { %v552_v54 = vrot.slane %v533_v49, 4  ;;  %v565_v61 = vsel %vm526_vm5, %v549_v59, %v564_v55  ;;  %v551_v5 = vsel %vm526_vm5, %v550_v63, %v533_v49 }
 0x22c   : > { %v573_v3 = vperm.slane %v565_v61, %v1942_v62  ;;  %v557_v10 = vperm.slane %v551_v5, %v1942_v62  ;;  %v578_v20 = vrot.slane %v569_v11, 4 }
 0x22d   : > { %v553_v60 = vsel %vm526_vm5, %v545_v58, %v552_v54 }
 0x22e   : > { %v561_v2 = vperm.slane %v553_v60, %v1942_v62  ;;  %v580_v13 = vrot.slane %v573_v3, 4  ;;  %v574_v19 = vrot.slane %v557_v10, 4  ;;  %v579_v39 = vsel %vm526_vm5, 0.0, %v578_v20 }
 0x230   : > { %v576_v12 = vrot.slane %v561_v2, 4  ;;  %v581_v21 = vsel %vm526_vm5, 0.0, %v580_v13  ;;  %v593_v27 = vsel %vm526_vm5, %v580_v13, %v569_v11  ;;  %v575_v41 = vsel %vm526_vm5, 0.0, %v574_v19 }
 0x231   : > { %v598_v30 = vrot.slane %v581_v21, 4  ;;  %v597_v48 = vperm.slane %v593_v27, %v1932_v47 }
 0x232   : > { %v577_v22 = vsel %vm526_vm5, 0.0, %v576_v12  ;;  %v582_v42 = vsel %vm526_vm5, %v576_v12, %v557_v10 }
 0x233   : > { %v587_v33 = vrot.slane %v577_v22, 4  ;;  %v599_v51 = vsel %vm526_vm5, %v598_v30, %v579_v39  ;;  %v586_v54 = vperm.slane %v582_v42, %v1932_v47  ;;  %v618_v2 = vrot.slane %v597_v48, 4 }
 0x234   : > { %v603_v60 = vperm.slane %v599_v51, %v1932_v47 }
 0x235   : > { %v588_v55 = vsel %vm526_vm5, %v587_v33, %v575_v41  ;;  %v606_v6 = vrot.slane %v586_v54, 4 }
 0x236   : > { %v592_v5 = vperm.slane %v588_v55, %v1932_v47  ;;  %v619_v22 = vsel %vm526_vm5, %v603_v60, %v618_v2 }
 0x238   : > { %v607_v21 = vsel %vm526_vm5, %v592_v5, %v606_v6 }
 0x27a   : > { %v1650_v4 = vpop.permute.xlu2 %1649 }
 0x27b   : > { %v1652_v7 = vunpack.i.h.bf16 %v1650_v4  ;;  %v1651_v9 = vunpack.i.l.bf16 %v1650_v4 }
 0x27d   : > { %v666_v15 = vrot.slane %v1652_v7, 4  ;;  %v654_v16 = vrot.slane %v1651_v9, 4 }
 0x29a   : > { %v1655_v14 = vpop.permute.xlu0 %1654 }
 0x29b   : > { %v1657_v17 = vunpack.i.h.bf16 %v1655_v14  ;;  %v1656_v18 = vunpack.i.l.bf16 %v1655_v14 }
 0x29d   : > { %v664_v23 = vrot.slane %v1657_v17, 4  ;;  %v667_v24 = vsel %vm526_vm5, %v1657_v17, %v666_v15  ;;  %v652_v25 = vrot.slane %v1656_v18, 4  ;;  %v655_v26 = vsel %vm526_vm5, %v1656_v18, %v654_v16 }
 0x29e   : > { %v675_v28 = vperm.slane %v667_v24, %v1932_v47  ;;  %v663_v29 = vperm.slane %v655_v26, %v1932_v47  ;;  %v616_v15 = vrot.slane %v603_v60, 4  ;;  %v604_v26 = vrot.slane %v592_v5, 4 }
 0x29f   : > { %v665_v31 = vsel %vm526_vm5, %v664_v23, %v1652_v7  ;;  %v653_v32 = vsel %vm526_vm5, %v652_v25, %v1651_v9 }
 0x2a0   : > { %v671_v34 = vperm.slane %v665_v31, %v1932_v47  ;;  %v688_v35 = vrot.slane %v675_v28, 4  ;;  %v659_v36 = vperm.slane %v653_v32, %v1932_v47  ;;  %v690_v38 = vrot.slane %v663_v29, 4 }
 0x2a1   : > { %v627_v32 = vperm.slane %v619_v22, %v1942_v62  ;;  %v605_v39 = vsel %vm526_vm5, %v604_v26, %v586_v54 }
 0x2a2   : > { %v676_v43 = vrot.slane %v671_v34, 4  ;;  %v678_v44 = vrot.slane %v659_v36, 4  ;;  %v689_v45 = vsel %vm526_vm5, %v688_v35, %v663_v29  ;;  %v691_v46 = vsel %vm526_vm5, %v675_v28, %v690_v38 }
 0x2a3   : > { %v695_v49 = vperm.slane %v689_v45, %v1942_v62  ;;  %v699_v50 = vperm.slane %v691_v46, %v1942_v62  ;;  %v617_v28 = vsel %vm526_vm5, %v616_v15, %v597_v48  ;;  %v632_v48 = vrot.slane %v627_v32, 4 }
 0x2a4   : > { %v677_v52 = vsel %vm526_vm5, %v676_v43, %v659_v36  ;;  %v679_v53 = vsel %vm526_vm5, %v671_v34, %v678_v44  ;;  %v615_v36 = vperm.slane %v607_v21, %v1942_v62  ;;  %v623_v41 = vperm.slane %v617_v28, %v1942_v62 }
 0x2a5   : > { %v683_v56 = vperm.slane %v677_v52, %v1942_v62  ;;  %v687_v57 = vperm.slane %v679_v53, %v1942_v62  ;;  %v704_v58 = vrot.slane %v695_v49, 4  ;;  %v706_v59 = vrot.slane %v699_v50, 4 }
 0x2a6   : > { %v611_v52 = vperm.slane %v605_v39, %v1942_v62 }
 0x2a7   : > { %v700_v61 = vrot.slane %v683_v56, 4  ;;  %v702_v63 = vrot.slane %v687_v57, 4  ;;  %v707_v1 = vsel %vm526_vm5, 0.0, %v706_v59  ;;  %v719_v4 = vsel %vm526_vm5, %v706_v59, %v695_v49 }
 0x2a8   : > { %v724_v3 = vrot.slane %v707_v1, 4  ;;  %v705_v9 = vsel %vm526_vm5, 0.0, %v704_v58  ;;  %v723_v11 = vperm.slane %v719_v4, %v1932_v47  ;;  %v634_v57 = vrot.slane %v615_v36, 4 }
 0x2a9   : > { %v703_v7 = vsel %vm526_vm5, 0.0, %v702_v63  ;;  %v708_v10 = vsel %vm526_vm5, %v702_v63, %v683_v56  ;;  %v701_v16 = vsel %vm526_vm5, 0.0, %v700_v61  ;;  %v628_v58 = vrot.slane %v623_v41, 4 }
 0x2aa   : > { %v712_v12 = vperm.slane %v708_v10, %v1932_v47  ;;  %v713_v13 = vrot.slane %v703_v7, 4  ;;  %v725_v14 = vsel %vm526_vm5, %v724_v3, %v705_v9  ;;  %v744_v18 = vrot.slane %v723_v11, 4 }
 0x2ab   : > { %v729_v17 = vperm.slane %v725_v14, %v1932_v47  ;;  %v633_v63 = vsel %vm526_vm5, %v632_v48, %v615_v36  ;;  %v630_v1 = vrot.slane %v611_v52, 4  ;;  %v629_v3 = vsel %vm526_vm5, %v628_v58, %v611_v52 }
 0x2ac   : > { %v714_v19 = vsel %vm526_vm5, %v713_v13, %v701_v16  ;;  %v732_v20 = vrot.slane %v712_v12, 4  ;;  %v635_v4 = vsel %vm526_vm5, %v627_v32, %v634_v57  ;;  %v638_v5 = vpack.c.bf16 %v633_v63, %v633_v63 }
 0x2ad   : > { %v718_v23 = vperm.slane %v714_v19, %v1932_v47  ;;  %v745_v24 = vsel %vm526_vm5, %v729_v17, %v744_v18  ;;  %v742_v25 = vrot.slane %v729_v17, 4  ;;  %v631_v6 = vsel %vm526_vm5, %v623_v41, %v630_v1 }
 0x2ae   : > { %v753_v27 = vperm.slane %v745_v24, %v1942_v62  ;;  %v636_v7 = vpack.c.bf16 %v629_v3, %v629_v3  ;;  %v639_v9 = vpack.c.bf16 %v635_v4, %v635_v4  ;;  %v637_v10 = vpack.c.bf16 %v631_v6, %v631_v6 }
 0x2af   : > { %v733_v29 = vsel %vm526_vm5, %v718_v23, %v732_v20  ;;  %v730_v30 = vrot.slane %v718_v23, 4  ;;  %v743_v31 = vsel %vm526_vm5, %v742_v25, %v723_v11  ;;  %v969_v11 = vlaneseq }
 0x2b0   : > { %v741_v33 = vperm.slane %v733_v29, %v1942_v62  ;;  %v758_v34 = vrot.slane %v753_v27, 4  ;;  %v749_v35 = vperm.slane %v743_v31, %v1942_v62 }
 0x2b1   : > { %v731_v38 = vsel %vm526_vm5, %v730_v30, %v712_v12  ;;  %v970_v12 = vshrl.u32 %v969_v11, 7  ;;  %v972_v13 = vand.u32 127, %v969_v11 }
 0x2b2   : > { %v759_v42 = vsel %vm526_vm5, %v758_v34, %v741_v33  ;;  %v737_v43 = vperm.slane %v731_v38, %v1942_v62  ;;  %v754_v44 = vrot.slane %v749_v35, 4  ;;  %v760_v45 = vrot.slane %v741_v33, 4 }
 0x2b3   : > { %v764_v46 = vpack.c.bf16 %v759_v42, %v759_v42  ;;  %vm973_vm7 = vcmp.ge.s32.totalorder %v970_v12, %v972_v13 }
 0x2b4   : > { %v755_v49 = vsel %vm526_vm5, %v754_v44, %v737_v43  ;;  %v761_v50 = vsel %vm526_vm5, %v753_v27, %v760_v45  ;;  %v756_v51 = vrot.slane %v737_v43, 4 }
 0x2b5   : > { %v935_v53 = vsel %vm892_vm6, %v764_v46, 0  ;;  %v762_v54 = vpack.c.bf16 %v755_v49, %v755_v49  ;;  %v765_v55 = vpack.c.bf16 %v761_v50, %v761_v50 }
 0x2b6   : > { %944 = vmatpush.bf16.xpose.msra.mxu3 %v935_v53  ;;  %v757_v56 = vsel %vm526_vm5, %v749_v35, %v756_v51 }
 0x2b7   : > { %v897_v59 = vsel %vm892_vm6, %v762_v54, 0  ;;  %v954_v60 = vsel %vm892_vm6, %v765_v55, 0  ;;  %v763_v61 = vpack.c.bf16 %v757_v56, %v757_v56 }
 0x2b8   : > { %906 = vmatpush.bf16.xpose.msra.mxu1 %v897_v59  ;;  %963 = vmatpush.bf16.xpose.msrb.mxu0 %v954_v60 }
 0x2b9   : > { %v916_v2 = vsel %vm892_vm6, %v763_v61, 0 }
 0x2ba   : > { %925 = vmatpush.bf16.xpose.msra.mxu2 %v916_v2 }
 0x2bd   : > { %1524 = vmatmul.msk.bf16.vlgmr.msra.gmra.mxu3 %vm892_vm6, %v638_v5 }
 0x2bf   : > { %1522 = vmatmul.msk.bf16.vlgmr.msra.gmra.mxu1 %vm892_vm6, %v636_v7  ;;  %1525 = vmatmul.msk.bf16.vlgmr.msrb.gmra.mxu0 %vm892_vm6, %v639_v9 }
 0x2c1   : > { %1523 = vmatmul.msk.bf16.vlgmr.msra.gmra.mxu2 %vm892_vm6, %v637_v10 }
 0x33c   : > { %v908_v14 = vpop.f32.mrf.mxu1  ;;  %v965_v15 = vpop.f32.mrf.mxu0 }
 0x33d   : > { %v976_v16 = vsel %vm973_vm7, %v908_v14, -inf  ;;  %v979_v17 = vsel %vm973_vm7, %v965_v15, -inf }
 0x33e   : > { %v989_v18 = vsel %vm892_vm6, %v979_v17, -inf  ;;  %v980_v19 = vsel %vm892_vm6, %v976_v16, -inf }
 0x33f   : > { %990 = vmax.xlane.f32.xlu2 %v989_v18  ;;  %981 = vmax.xlane.f32.xlu0 %v980_v19 }
 0x340   : > { %v946_v20 = vpop.f32.mrf.mxu3 }
 0x341   : > { %v978_v21 = vsel %vm973_vm7, %v946_v20, -inf }
 0x342   : > { %v986_v22 = vsel %vm892_vm6, %v978_v21, -inf }
 0x343   : > { %987 = vmax.xlane.f32.xlu1 %v986_v22 }
 0x344   : > { %v910_v23 = vpop.f32.mrf.mxu1  ;;  %v927_v24 = vpop.f32.mrf.mxu2 }
 0x345   : > { %v977_v25 = vsel %vm973_vm7, %v927_v24, -inf  ;;  %v967_v26 = vpop.f32.mrf.mxu0 }
 0x346   : > { %v983_v27 = vsel %vm892_vm6, %v977_v25, -inf }
 0x347   : > { %984 = vmax.xlane.f32.xlu2 %v983_v27 }
 0x348   : > { %v948_v28 = vpop.f32.mrf.mxu3 }
 0x34c   : > { %v929_v29 = vpop.f32.mrf.mxu2 }
 0x35c   : > { %1659 = vrot.lane.b32.xlu1 %v1924_v37, %s1771_s23 }
 0x35f   : > { %1664 = vrot.lane.b32.xlu2 %v1927_v40, %s1771_s23  ;;  %s431_s23 = scalar_lea.vmem [#allocation2], %s1511_s1  ;;  %s1720_s1 = scalar_lea.hbm %s2246_s13, 16 }
 0x3b2   : > { %v991_v30 = vpop.xlane.xlu2 %990  ;;  %v982_v33 = vpop.xlane.xlu0 %981 }
 0x3b3   : > { %v995_v31 = vsub.f32 %v979_v17, %v991_v30  ;;  %v992_v36 = vsub.f32 %v976_v16, %v982_v33 }
 0x3b5   : > { %v1002_v32 = vmul.f32 1.442695, %v995_v31  ;;  %v996_v43 = vmul.f32 1.442695, %v992_v36 }
 0x3b6   : > { %v988_v34 = vpop.xlane.xlu1 %987 }
 0x3b7   : > { %1680 = vpow2.f32 %v1002_v32  ;;  %v994_v35 = vsub.f32 %v978_v21, %v988_v34 }
 0x3b9   : > { %v1000_v38 = vmul.f32 1.442695, %v994_v35 }
 0x3ba   : > { %v985_v39 = vpop.xlane.xlu2 %984 }
 0x3bb   : > { %1682 = vpow2.f32 %v1000_v38  ;;  %v993_v41 = vsub.f32 %v977_v25, %v985_v39 }
 0x3bd   : > { %v2028_v42 = vpop.eup %1680  ;;  %v998_v44 = vmul.f32 1.442695, %v993_v41 }
 0x3be   : > { %v1013_v37 = vsel %vm892_vm6, %v2028_v42, 0.0 }
 0x3bf   : > { %1684 = vpow2.f32 %v998_v44  ;;  %1014 = vadd.xlane.f32.xlu2 %v1013_v37 }
 0x3c0   : > { %1686 = vpow2.f32 %v996_v43 }
 0x3c1   : > { %v2032_v40 = vpop.eup %1682 }
 0x3c2   : > { %v1010_v45 = vsel %vm892_vm6, %v2032_v40, 0.0  ;;  %v1665_v50 = vpop.permute.xlu2 %1664 }
 0x3c3   : > { %1011 = vadd.xlane.f32.xlu0 %v1010_v45  ;;  %v1667_v52 = vunpack.i.h.bf16 %v1665_v50  ;;  %v1666_v53 = vunpack.i.l.bf16 %v1665_v50 }
 0x3c5   : > { %v2036_v46 = vpop.eup %1684  ;;  %v790_v55 = vrot.slane %v1667_v52, 4  ;;  %v778_v56 = vrot.slane %v1666_v53, 4 }
 0x3c6   : > { %v1007_v48 = vsel %vm892_vm6, %v2036_v46, 0.0  ;;  %v2040_v49 = vpop.eup %1686 }
 0x3c7   : > { %1008 = vadd.xlane.f32.xlu1 %v1007_v48  ;;  %v1004_v51 = vsel %vm892_vm6, %v2040_v49, 0.0 }
 0x3cb   : > { %1005 = vadd.xlane.f32.xlu0 %v1004_v51 }
 0x3ce   : > { %v1660_v54 = vpop.permute.xlu1 %1659 }
 0x3cf   : > { %v1662_v57 = vunpack.i.h.bf16 %v1660_v54  ;;  %v1661_v58 = vunpack.i.l.bf16 %v1660_v54 }
 0x3d1   : > { %v792_v59 = vrot.slane %v1662_v57, 4  ;;  %v779_v60 = vsel %vm526_vm5, %v778_v56, %v1661_v58  ;;  %v780_v61 = vrot.slane %v1661_v58, 4  ;;  %v791_v63 = vsel %vm526_vm5, %v790_v55, %v1662_v57 }
 0x3d2   : > { %v785_v1 = vperm.slane %v779_v60, %v1932_v47  ;;  %v797_v2 = vperm.slane %v791_v63, %v1932_v47 }
 0x3d3   : > { %v781_v3 = vsel %vm526_vm5, %v1666_v53, %v780_v61  ;;  %v793_v4 = vsel %vm526_vm5, %v1667_v52, %v792_v59 }
 0x3d4   : > { %v789_v5 = vperm.slane %v781_v3, %v1932_v47  ;;  %v801_v6 = vperm.slane %v793_v4, %v1932_v47  ;;  %v802_v7 = vrot.slane %v797_v2, 4  ;;  %v804_v9 = vrot.slane %v785_v1, 4 }
 0x3d6   : > { %v803_v10 = vsel %vm526_vm5, %v802_v7, %v785_v1  ;;  %v805_v11 = vsel %vm526_vm5, %v797_v2, %v804_v9  ;;  %v814_v12 = vrot.slane %v801_v6, 4  ;;  %v816_v13 = vrot.slane %v789_v5, 4 }
 0x3d7   : > { %v809_v14 = vperm.slane %v803_v10, %v1942_v62  ;;  %v813_v15 = vperm.slane %v805_v11, %v1942_v62 }
 0x3d8   : > { %v815_v16 = vsel %vm526_vm5, %v814_v12, %v789_v5  ;;  %v817_v17 = vsel %vm526_vm5, %v801_v6, %v816_v13 }
 0x3d9   : > { %v821_v18 = vperm.slane %v815_v16, %v1942_v62  ;;  %v825_v19 = vperm.slane %v817_v17, %v1942_v62  ;;  %v826_v20 = vrot.slane %v809_v14, 4  ;;  %v828_v21 = vrot.slane %v813_v15, 4 }
 0x3db   : > { %v829_v22 = vsel %vm526_vm5, 0.0, %v828_v21  ;;  %v830_v23 = vrot.slane %v821_v18, 4  ;;  %v832_v24 = vrot.slane %v825_v19, 4  ;;  %v834_v25 = vsel %vm526_vm5, %v828_v21, %v809_v14 }
 0x3dc   : > { %v839_v26 = vrot.slane %v829_v22, 4  ;;  %v827_v27 = vsel %vm526_vm5, 0.0, %v826_v20  ;;  %v838_v29 = vperm.slane %v834_v25, %v1932_v47 }
 0x3dd   : > { %v833_v28 = vsel %vm526_vm5, 0.0, %v832_v24  ;;  %v845_v30 = vsel %vm526_vm5, %v832_v24, %v821_v18  ;;  %v831_v34 = vsel %vm526_vm5, 0.0, %v830_v23 }
 0x3de   : > { %v850_v31 = vrot.slane %v833_v28, 4  ;;  %v840_v32 = vsel %vm526_vm5, %v839_v26, %v827_v27  ;;  %v849_v33 = vperm.slane %v845_v30, %v1932_v47  ;;  %v858_v36 = vrot.slane %v838_v29, 4 }
 0x3df   : > { %v844_v35 = vperm.slane %v840_v32, %v1932_v47 }
 0x3e0   : > { %v851_v38 = vsel %vm526_vm5, %v850_v31, %v831_v34  ;;  %v870_v39 = vrot.slane %v849_v33, 4 }
 0x3e1   : > { %v855_v41 = vperm.slane %v851_v38, %v1932_v47  ;;  %v859_v43 = vsel %vm526_vm5, %v844_v35, %v858_v36  ;;  %v856_v44 = vrot.slane %v844_v35, 4 }
 0x3e2   : > { %v867_v37 = vperm.slane %v859_v43, %v1942_v62 }
 0x3e3   : > { %v871_v45 = vsel %vm526_vm5, %v855_v41, %v870_v39  ;;  %v857_v48 = vsel %vm526_vm5, %v856_v44, %v838_v29  ;;  %v868_v50 = vrot.slane %v855_v41, 4 }
 0x3e4   : > { %v879_v51 = vperm.slane %v871_v45, %v1942_v62  ;;  %v886_v52 = vrot.slane %v867_v37, 4  ;;  %v863_v53 = vperm.slane %v857_v48, %v1942_v62 }
 0x3e5   : > { %v869_v54 = vsel %vm526_vm5, %v868_v50, %v849_v33 }
 0x3e6   : > { %v887_v55 = vsel %vm526_vm5, %v879_v51, %v886_v52  ;;  %v875_v56 = vperm.slane %v869_v54, %v1942_v62  ;;  %v882_v57 = vrot.slane %v863_v53, 4  ;;  %v884_v58 = vrot.slane %v879_v51, 4 }
 0x3e7   : > { %v891_v59 = vpack.c.bf16 %v887_v55, %v887_v55 }
 0x3e8   : > { %v883_v60 = vsel %vm526_vm5, %v875_v56, %v882_v57  ;;  %v885_v61 = vsel %vm526_vm5, %v884_v58, %v867_v37  ;;  %v880_v63 = vrot.slane %v875_v56, 4 }
 0x3e9   : > { %v1090_v1 = vsel %vm1031_vm8, %v891_v59, 0  ;;  %v889_v2 = vpack.c.bf16 %v883_v60, %v883_v60  ;;  %v890_v3 = vpack.c.bf16 %v885_v61, %v885_v61 }
 0x3ea   : > { %1099 = vmatpush.bf16.msra.mxu0 %v1090_v1  ;;  %v881_v4 = vsel %vm526_vm5, %v880_v63, %v863_v53 }
 0x3eb   : > { %v1052_v5 = vsel %vm1031_vm8, %v889_v2, 0  ;;  %v1071_v6 = vsel %vm1031_vm8, %v890_v3, 0  ;;  %v888_v7 = vpack.c.bf16 %v881_v4, %v881_v4 }
 0x3ec   : > { %1061 = vmatpush.bf16.msrb.mxu2 %v1052_v5  ;;  %1080 = vmatpush.bf16.msrb.mxu3 %v1071_v6 }
 0x3ed   : > { %v1033_v9 = vsel %vm1031_vm8, %v888_v7, 0 }
 0x3ee   : > { %1042 = vmatpush.bf16.msrb.mxu1 %v1033_v9 }
 0x432   : > { %v1015_v10 = vpop.xlane.xlu2 %1014 }
 0x433   : > { %1688 = vrcp.f32 %v1015_v10 }
 0x436   : > { %v1012_v11 = vpop.xlane.xlu0 %1011 }
 0x437   : > { %1690 = vrcp.f32 %v1012_v11 }
 0x439   : > { %v1689_v12 = vpop.eup %1688 }
 0x43a   : > { %v1023_v13 = vmul.f32 %v1689_v12, %v2028_v42  ;;  %v1009_v14 = vpop.xlane.xlu1 %1008 }
 0x43b   : > { %1692 = vrcp.f32 %v1009_v14 }
 0x43c   : > { %v1027_v15 = vpack.c.bf16 %v1023_v13, %v1023_v13 }
 0x43d   : > { %v1691_v16 = vpop.eup %1690 }
 0x43e   : > { %v1022_v17 = vmul.f32 %v1691_v16, %v2032_v40  ;;  %1529 = vmatmul.msk.bf16.vlgmr.msra.gmra.mxu0 %vm892_vm6, %v1027_v15  ;;  %v1006_v18 = vpop.xlane.xlu0 %1005 }
 0x43f   : > { %1694 = vrcp.f32 %v1006_v18 }
 0x440   : > { %v1026_v19 = vpack.c.bf16 %v1022_v17, %v1022_v17 }
 0x441   : > { %v1693_v20 = vpop.eup %1692 }
 0x442   : > { %v1021_v21 = vmul.f32 %v1693_v20, %v2036_v46  ;;  %1528 = vmatmul.msk.bf16.vlgmr.msrb.gmra.mxu3 %vm892_vm6, %v1026_v19 }
 0x444   : > { %v1025_v22 = vpack.c.bf16 %v1021_v21, %v1021_v21 }
 0x445   : > { %v1695_v23 = vpop.eup %1694 }
 0x446   : > { %v1020_v42 = vmul.f32 %v1695_v23, %v2040_v49  ;;  %1527 = vmatmul.msk.bf16.vlgmr.msrb.gmra.mxu2 %vm892_vm6, %v1025_v22 }
 0x448   : > { %v1024_v24 = vpack.c.bf16 %v1020_v42, %v1020_v42 }
 0x44a   : > { %1526 = vmatmul.msk.bf16.vlgmr.msrb.gmra.mxu1 %vm892_vm6, %v1024_v24 }
 0x4bb   : > { %v1101_v40 = vpop.f32.mrf.mxu0 }
 0x4bc   : > { %v1117_v29 = vrot.slane %v1101_v40, 4 }
 0x4c3   : > { %v1103_v25 = vpop.f32.mrf.mxu0 }
 0x4c5   : > { %v1082_v26 = vpop.f32.mrf.mxu3 }
 0x4c6   : > { %v1105_v27 = vrot.slane %v1082_v26, 4 }
 0x4c7   : > { %v1044_v28 = vpop.f32.mrf.mxu1 }
 0x4c8   : > { %v1106_v30 = vsel %vm526_vm5, %v1105_v27, %v1044_v28  ;;  %v1107_v46 = vrot.slane %v1044_v28, 4 }
 0x4c9   : > { %v1112_v31 = vperm.slane %v1106_v30, %v1932_v47  ;;  %v1063_v32 = vpop.f32.mrf.mxu2 }
 0x4ca   : > { %v1108_v33 = vsel %vm526_vm5, %v1082_v26, %v1107_v46  ;;  %v1118_v49 = vsel %vm526_vm5, %v1117_v29, %v1063_v32  ;;  %v1119_v34 = vrot.slane %v1063_v32, 4  ;;  %v1587_v32 = vld [vmem:[%s2238_s5 + $0x8] sm:$0xff] }
 0x4cb   : > { %v1116_v35 = vperm.slane %v1108_v33, %v1932_v47  ;;  %v1131_v36 = vrot.slane %v1112_v31, 4  ;;  %v1124_v38 = vperm.slane %v1118_v49, %v1932_v47  ;;  %1262 = vmatpush.bf16.msra.mxu1 %v1587_v32  ;;  %v1586_v33 = vld [vmem:[%s2238_s5] sm:$0xff] }
 0x4cc   : > { %v1120_v39 = vsel %vm526_vm5, %v1101_v40, %v1119_v34 }
 0x4cd   : > { %v1143_v41 = vrot.slane %v1116_v35, 4  ;;  %v1128_v43 = vperm.slane %v1120_v39, %v1932_v47  ;;  %v1129_v44 = vrot.slane %v1124_v38, 4  ;;  %v1132_v37 = vsel %vm526_vm5, %v1124_v38, %v1131_v36  ;;  %v1084_v45 = vpop.f32.mrf.mxu3 }
 0x4ce   : > { %v1140_v48 = vperm.slane %v1132_v37, %v1942_v62 }
 0x4cf   : > { %v1130_v50 = vsel %vm526_vm5, %v1129_v44, %v1112_v31  ;;  %v1141_v51 = vrot.slane %v1128_v43, 4  ;;  %v1144_v52 = vsel %vm526_vm5, %v1128_v43, %v1143_v41  ;;  %v1046_v53 = vpop.f32.mrf.mxu1  ;;  %1263 = vmatpush.bf16.msra.mxu1 %v1586_v33  ;;  %v1671_v41 = vld [vmem:[%s2239_s6] ss:$0 sm:$0xff] }
 0x4d0   : > { %v1136_v54 = vperm.slane %v1130_v50, %v1942_v62  ;;  %v1152_v55 = vperm.slane %v1144_v52, %v1942_v62  ;;  %v1155_v56 = vrot.slane %v1140_v48, 4 }
 0x4d1   : > { %v1142_v57 = vsel %vm526_vm5, %v1141_v51, %v1116_v35  ;;  %v1065_v58 = vpop.f32.mrf.mxu2 }
 0x4d2   : > { %v1148_v59 = vperm.slane %v1142_v57, %v1942_v62  ;;  %v1153_v60 = vrot.slane %v1136_v54, 4  ;;  %v1156_v61 = vsel %vm526_vm5, 0.0, %v1155_v56  ;;  %v1159_v63 = vrot.slane %v1152_v55, 4  ;;  %v1589_v55 = vld [vmem:[%s2242_s9 + $0x8] sm:$0xff] }
 0x4d3   : > { %v1166_v1 = vrot.slane %v1156_v61, 4  ;;  %v1161_v5 = vsel %vm526_vm5, %v1155_v56, %v1136_v54  ;;  %1332 = vmatpush.bf16.msra.mxu2 %v1589_v55  ;;  %v1597_v56 = vld [vmem:[%s2244_s11 + $0x38] sm:$0xff] }
 0x4d4   : > { %v1154_v2 = vsel %vm526_vm5, 0.0, %v1153_v60  ;;  %v1157_v3 = vrot.slane %v1148_v59, 4  ;;  %v1160_v4 = vsel %vm526_vm5, 0.0, %v1159_v63  ;;  %v1172_v9 = vsel %vm526_vm5, %v1159_v63, %v1148_v59  ;;  %1417 = vmatpush.bf16.msra.mxu3 %v1597_v56  ;;  %v1596_v59 = vld [vmem:[%s2244_s11 + $0x30] sm:$0xff] }
 0x4d5   : > { %v1167_v6 = vsel %vm526_vm5, %v1166_v1, %v1154_v2  ;;  %v1177_v7 = vrot.slane %v1160_v4, 4  ;;  %v1176_v12 = vperm.slane %v1172_v9, %v1932_v47  ;;  %v1165_v14 = vperm.slane %v1161_v5, %v1932_v47 }
 0x4d6   : > { %v1158_v10 = vsel %vm526_vm5, 0.0, %v1157_v3  ;;  %v1171_v11 = vperm.slane %v1167_v6, %v1932_v47 }
 0x4d7   : > { %v1178_v13 = vsel %vm526_vm5, %v1177_v7, %v1158_v10  ;;  %v1197_v17 = vrot.slane %v1176_v12, 4  ;;  %v1185_v24 = vrot.slane %v1165_v14, 4  ;;  %v1673_v7 = vld [vmem:[%s2241_s8] ss:$0 sm:$0xff] }
 0x4d8   : > { %v1182_v15 = vperm.slane %v1178_v13, %v1932_v47  ;;  %v1183_v16 = vrot.slane %v1171_v11, 4  ;;  %1418 = vmatpush.bf16.msra.mxu3 %v1596_v59  ;;  %v1594_v13 = vld [vmem:[%s2244_s11 + $0x20] sm:$0xff] }
 0x4d9   : > { %v1186_v27 = vsel %vm526_vm5, %v1171_v11, %v1185_v24 }
 0x4da   : > { %v1184_v18 = vsel %vm526_vm5, %v1183_v16, %v1165_v14  ;;  %v1195_v19 = vrot.slane %v1182_v15, 4  ;;  %v1198_v22 = vsel %vm526_vm5, %v1182_v15, %v1197_v17  ;;  %v1194_v29 = vperm.slane %v1186_v27, %v1942_v62  ;;  %v1593_v14 = vld [vmem:[%s2244_s11 + $0x18] sm:$0xff]  ;;  %v1592_v15 = vld [vmem:[%s2244_s11 + $0x10] sm:$0xff]  ;;  %v1591_v16 = vld [vmem:[%s2244_s11 + $0x8] sm:$0xff] }
 0x4db   : > { %v1190_v20 = vperm.slane %v1184_v18, %v1942_v62  ;;  %v1206_v47 = vperm.slane %v1198_v22, %v1942_v62  ;;  %v1590_v17 = vld [vmem:[%s2244_s11] sm:$0xff] }
 0x4dc   : > { %v1196_v21 = vsel %vm526_vm5, %v1195_v19, %v1176_v12  ;;  %v1213_v46 = vrot.slane %v1194_v29, 4  ;;  %v1595_v12 = vld [vmem:[%s2244_s11 + $0x28] sm:$0xff]  ;;  %v1674_v18 = vld [vmem:[%s2243_s10] ss:$0 sm:$0xff] }
 0x4dd   : > { %v1202_v23 = vperm.slane %v1196_v21, %v1942_v62  ;;  %v1209_v42 = vrot.slane %v1190_v20, 4  ;;  %v1211_v28 = vrot.slane %v1206_v47, 4  ;;  %1419 = vmatpush.bf16.msra.mxu3 %v1595_v12 }
 0x4de   : > { %v1214_v31 = vsel %vm526_vm5, %v1206_v47, %v1213_v46 }
 0x4df   : > { %v1207_v40 = vrot.slane %v1202_v23, 4  ;;  %v1210_v25 = vsel %vm526_vm5, %v1202_v23, %v1209_v42  ;;  %v1212_v30 = vsel %vm526_vm5, %v1211_v28, %v1194_v29  ;;  %v1675_v29 = vld [vmem:[%s2245_s12] ss:$0 sm:$0xff] }
 0x4e0   : > { %1216 = vrot.lane.b32.xlu0 %v1210_v25, %s1772_s24  ;;  %s1445_s24 = sshll.u32 %s431_s23, 4  ;;  %s1446_s24 = int_to_ptr.vmem [resolvable:$true] %s1445_s24 }
 0x4e1   : > { %v1208_v26 = vsel %vm526_vm5, %v1207_v40, %v1190_v20  ;;  %1420 = vmatpush.bf16.msra.mxu3 %v1594_v13 }
 0x4e5   : > { %1421 = vmatpush.bf16.msra.mxu3 %v1593_v14 }
 0x4e8   : > { %1220 = vrot.lane.b32.xlu0 %v1212_v30, %s1773_s30  ;;  %s1581_s30 = sshll.u32 %s1866_s29, 3  ;;  %s1433_s29 = scalar_lea.sflag [#allocation3], %s429_s0 }
 0x4e9   : > { %1422 = vmatpush.bf16.msra.mxu3 %v1592_v15  ;;  %s1443_s22 = scalar_lea.hbm %s2246_s13, %s1581_s30 }
 0x4ea   : > { %s1447_s2 = sshll.u32 %s1443_s22, 4  ;;  %s1448_s2 = int_to_ptr.hbm [resolvable:$true] %s1447_s2 }
 0x4eb   : > { %s1714_s3 = sshra.s32 %s1448_s2, 4  ;;  %s1715_s3 = int_to_ptr.hbm [resolvable:$true] %s1714_s3 }
 0x4ec   : > { %p1721_p0 = scmp.lt.s32.totalorder %s1715_s3, %s2246_s13 }
 0x4ed   : > { %1423 = vmatpush.bf16.msra.mxu3 %v1591_v16 }
 0x4f0   : > { %1224 = vrot.lane.b32.xlu0 %v1214_v31, %s1774_s15  ;;  %s1716_s15 = scalar_lea.hbm %s1715_s3, 8 }
 0x4f1   : > { %1424 = vmatpush.bf16.msra.mxu3 %v1590_v17  ;;  %p1717_p11 = scmp.ne.s32.totalorder %s1715_s3, %s1716_s15  ;;  %p1722_p1 = scmp.lt.s32.totalorder %s1720_s1, %s1716_s15 }
 0x4f3   : > { %p1718_p12 = pnand %p1717_p11, %p1883_p5  ;;  %p1723_p2 = por %p1722_p1, %p1721_p0 }
 0x4f5   : > { %p1719_p13 = pneg %p1718_p12 }
 0x4f7   : > { %p1724_p3 = pnand %p1723_p2, %p1719_p13 }
 0x552   : > { %v1217_v62 = vpop.permute.xlu0 %1216 }
 0x553   : > { %v1227_v34 = vsel %vm892_vm6, %v1208_v26, %v1217_v62 }
 0x55a   : > { %v1221_v49 = vpop.permute.xlu0 %1220 }
 0x55b   : > { %v1229_v35 = vsel %vm1228_vm9, %v1227_v34, %v1221_v49 }
 0x562   : > { %v1225_v36 = vpop.permute.xlu0 %1224 }
 0x563   : > { %v1231_v38 = vsel %vm1230_vm10, %v1229_v35, %v1225_v36 }
 0x564   : > { %v1232_v39 = vpack.c.bf16 %v1231_v38, %v1231_v38 }
 0x566   : > { %1538 = vmatmul.msk.bf16.vlgmr.msra.gmra.mxu1 %vm440_vm0, %v1232_v39 }
 0x5e3   : > { %v1265_v43 = vpop.f32.mrf.mxu1 }
 0x5e4   : > { %v1266_v44 = vadd.f32 %v1671_v41, %v1265_v43 }
 0x5e6   : > { %v2148_v37 = vadd.f32 %v1266_v44, %v1898_v0  ;;  %v1588_v0 = vld [vmem:[%s2242_s9] sm:$0xff] }
 0x5e7   : > { %1333 = vmatpush.bf16.msra.mxu2 %v1588_v0 }
 0x5e8   : > { %v1272_v45 = vsel %vm440_vm0, %v2148_v37, 0.0 }
 0x5e9   : > { %1273 = vadd.xlane.f32.xlu1 %v1272_v45 }
 0x5eb   : > { %v1267_v48 = vpop.f32.mrf.mxu1 }
 0x65c   : > { %v1274_v50 = vpop.xlane.xlu1 %1273 }
 0x65d   : > { %v1275_v51 = vmul.f32 %v1274_v50, %v1902_v8 }
 0x65f   : > { %v1276_v52 = vsub.f32 %v2148_v37, %v1275_v51 }
 0x661   : > { %v1277_v53 = vmul.f32 %v1276_v52, %v1276_v52 }
 0x663   : > { %v1278_v54 = vsel %vm440_vm0, %v1277_v53, 0.0 }
 0x664   : > { %1279 = vadd.xlane.f32.xlu0 %v1278_v54 }
 0x6d7   : > { %v1280_v57 = vpop.xlane.xlu0 %1279 }
 0x6d8   : > { %v1281_v58 = vmul.f32 %v1280_v57, %v1902_v8  ;;  %v1672_v8 = vld [vmem:[%s2240_s7] ss:$0 sm:$0xff] }
 0x6da   : > { %v1282_v60 = vadd.f32 1e-05, %v1281_v58 }
 0x6dc   : > { %1696 = vrsqrt.f32 %v1282_v60  ;;  %vm1289_vm12 = vweird.f32 %v1282_v60 }
 0x6e2   : > { %v1697_v61 = vpop.eup %1696 }
 0x6e3   : > { %v1284_v63 = vmul.f32 %v1697_v61, %v1282_v60  ;;  %vm1290_vm11 = vweird.f32 %v1697_v61 }
 0x6e4   : > { %vm1291_vm13 = vmor %vm1289_vm12, %vm1290_vm11 }
 0x6e5   : > { %v1285_v1 = vmul.f32 %v1697_v61, %v1284_v63 }
 0x6e7   : > { %v1286_v2 = vmul.f32 0.5, %v1285_v1 }
 0x6e9   : > { %v1287_v3 = vsub.f32 1.5, %v1286_v2 }
 0x6eb   : > { %v1288_v4 = vmul.f32 %v1697_v61, %v1287_v3 }
 0x6ed   : > { %v1292_v5 = vsel %vm1291_vm13, %v1697_v61, %v1288_v4 }
 0x6ee   : > { %v1293_v6 = vmul.f32 %v1292_v5, %v1276_v52 }
 0x6f0   : > { %v1297_v9 = vmul.f32 %v1672_v8, %v1293_v6 }
 0x6f2   : > { %v1301_v10 = vadd.f32 %v1673_v7, %v1297_v9 }
 0x6f4   : > { %v1302_v11 = vpack.c.bf16 %v1301_v10, %v1301_v10 }
 0x6f6   : > { %1547 = vmatmul.msk.bf16.vlgmr.msra.gmra.mxu2 %vm440_vm0, %v1302_v11 }
 0x779   : > { %v1335_v19 = vpop.f32.mrf.mxu2 }
 0x77a   : > { %v1336_v20 = vadd.f32 %v1674_v18, %v1335_v19 }
 0x77c   : > { %v1340_v21 = vmul.f32 0.044715, %v1336_v20  ;;  %v1339_v47 = vmul.f32 0.5, %v1336_v20 }
 0x77e   : > { %v1341_v22 = vmul.f32 %v1340_v21, %v1336_v20 }
 0x780   : > { %v1342_v23 = vmul.f32 %v1341_v22, %v1336_v20 }
 0x781   : > { %v1337_v42 = vpop.f32.mrf.mxu2 }
 0x782   : > { %v1343_v24 = vadd.f32 %v1342_v23, %v1336_v20 }
 0x784   : > { %v1344_v40 = vmul.f32 0.7978846, %v1343_v24 }
 0x786   : > { %1698 = vtanh.f32 %v1344_v40 }
 0x78c   : > { %v1699_v25 = vpop.eup %1698 }
 0x78d   : > { %v1346_v26 = vadd.f32 1.0, %v1699_v25 }
 0x78f   : > { %v1347_v27 = vmul.f32 %v1346_v26, %v1339_v47 }
 0x791   : > { %v1348_v28 = vpack.c.bf16 %v1347_v27, %v1347_v27 }
 0x793   : > { %1425 = vmatmul.bf16.vlgmr.msra.gmra.mxu3 %v1348_v28 }
 0x816   : > { %v1426_v30 = vpop.f32.mrf.mxu3 }
 0x817   : > { %v1427_v46 = vadd.f32 %v1675_v29, %v1426_v30 }
 0x819   : > { %v1430_v31 = vadd.f32 %v1427_v46, %v2148_v37 }
 0x81b   : > { %1431 = vst.msk [vmem:[%s431_s23] sm:$0xff] %vm440_vm0, %v1430_v31 }
 0x81c   : > { %1727 = shalt.err (!%p1724_p3)
}
 0x81d   : > { %1598 = dma.vmem_to_hbm [thread:$0]  (%p1883_p5), %s1446_s24, 128, %s1448_s2, %s1433_s29  }
 0x81e   : > { %v1428_v32 = vpop.f32.mrf.mxu3 }
 0x81f PF: > { %p1604_p4 = scmp.ge.s32.totalorder %s1762_s28, 2  ;;  %s1459_s0 = sand.u32 1, %s1750_s25  }
 0x820   : > { %s1460_s22 = scalar_lea.sflag [#allocation3], %s1459_s0 }
 0x821   : > { %p1601_p7 = pnand %p1604_p4, %p1887_p6 }
 0x823   : > { %p1602_p8 = pneg %p1601_p7 }
 0x825   : > { %1745 = dma.done.wait (%p1602_p8), %s1460_s22, 128  }
 0x826   : > { %1747 = vsyncadd (%p1602_p8), %s1460_s22, 4294967168  ;;  %p23_p9 = scmp.ge.s32.totalorder %s1870_s14, 4   ;;  %s2257_s25 = smov %s1754_s26 }
 0x827   : > { %s2258_s26 = smov %s1758_s27  ;;  %s2259_s27 = smov %s1881_s17 }
 0x828   : > { %s2260_s28 = smov %s1870_s14  ;;  %25 = sbr.rel (!%p23_p9) target bundleno = 8 (0x8), region = 107 }
 0x82d   :  { %1466 = vsyncpa [#allocation3], 1 }
 0x82e   :  { %1468 = vsyncpa [#allocation3 + $0x1], 1 }

</bundles_post_ra>
